<compile_context>
chip_gen: v7x
topology: tpu7x:2x2x1
jax: 0.10.0
libtpu: 0.0.40
codegen_flags: <defaults>
</compile_context>

<pallas_src>
import math
import functools

import jax
import jax.numpy as jnp
from jax.experimental import pallas as pl
from jax.experimental.pallas import tpu as pltpu

NEG_INF = -1e30  # large finite negative: keeps fully-masked rows NaN-free


def _pick_block(t, target):
    """Largest multiple of 128 that divides t and is <= target, else t itself."""
    best = None
    m = 128
    while m <= min(t, target):
        if t % m == 0:
            best = m
        m += 128
    return best if best is not None else t


# ---------------------------------------------------------------------------
# Kernel A: key/value projection -> per-head K and V planes (B, H, T2, d_k)
# ---------------------------------------------------------------------------
def _kv_proj_kernel(k_in_ref, v_in_ref, wk_ref, bk_ref, wv_ref, bv_ref,
                    k_out_ref, v_out_ref, *, n_head, d_k):
    # bf16 operands on the MXU, f32 accumulation; pre-transposed weights.
    k_all = jnp.dot(k_in_ref[0].astype(jnp.bfloat16), wk_ref[...],
                    preferred_element_type=jnp.float32) + bk_ref[...]
    v_all = jnp.dot(v_in_ref[0].astype(jnp.bfloat16), wv_ref[...],
                    preferred_element_type=jnp.float32) + bv_ref[...]
    for h in range(n_head):                       # static, n_head is small
        sl = slice(h * d_k, (h + 1) * d_k)        # static lane slice, once per tile
        k_out_ref[0, h] = k_all[:, sl]
        v_out_ref[0, h] = v_all[:, sl]


# ---------------------------------------------------------------------------
# Kernel B: flash attention + full-width Q / output projections
# ---------------------------------------------------------------------------
def _flash_attn_kernel(q_ref, mask_ref, k_ref, v_ref, wq_ref, bq_ref, wo_ref,
                       bo_ref, out_ref, qh_scr, m_scr, l_scr, acc_scr, ctx_scr,
                       *, n_head, d_k, scale):
    h = pl.program_id(2)
    kj = pl.program_id(3)
    n_k = pl.num_programs(3)

    @pl.when(jnp.logical_and(h == 0, kj == 0))
    def _project_q():
        # Full-width Q projection for ALL heads, once per (batch, q-tile).
        q_all = (jnp.dot(q_ref[0].astype(jnp.bfloat16), wq_ref[...],
                         preferred_element_type=jnp.float32)
                 + bq_ref[...]) * scale
        for hh in range(n_head):                  # static split into head scratch
            qh_scr[hh] = q_all[:, hh * d_k:(hh + 1) * d_k].astype(jnp.bfloat16)

    @pl.when(kj == 0)
    def _init_head():
        m_scr[...] = jnp.full_like(m_scr, NEG_INF)
        l_scr[...] = jnp.zeros_like(l_scr)
        acc_scr[...] = jnp.zeros_like(acc_scr)

    k_h = k_ref[0, 0].astype(jnp.bfloat16)        # (Tk, d_k), aligned plane
    v_h = v_ref[0, 0].astype(jnp.bfloat16)        # (Tk, d_k), aligned plane
    q_h = qh_scr[h]                               # (Tq, d_k) bf16

    # scores: q @ k.T without materializing a transpose (bf16 MXU, f32 acc)
    s = jax.lax.dot_general(q_h, k_h, (((1,), (1,)), ((), ())),
                            preferred_element_type=jnp.float32)      # (Tq, Tk)
    invalid = mask_ref[0] == 0                                        # (1|Tq, Tk)
    s = jnp.where(invalid, NEG_INF, s)

    # online softmax update
    m_prev = m_scr[...]
    m_new = jnp.maximum(m_prev, jnp.max(s, axis=-1, keepdims=True))
    alpha = jnp.exp(m_prev - m_new)
    # Clamp the exp argument so masked entries (and fully-masked rows) underflow
    # to exactly 0 -- no second select needed.
    p = jnp.exp(s - jnp.maximum(m_new, 0.5 * NEG_INF))
    l_scr[...] = alpha * l_scr[...] + jnp.sum(p, axis=-1, keepdims=True)
    acc_scr[...] = alpha * acc_scr[...] + jnp.dot(
        p.astype(jnp.bfloat16), v_h, preferred_element_type=jnp.float32)
    m_scr[...] = m_new

    @pl.when(kj == n_k - 1)
    def _finalize_head():
        # Fully-masked rows have l == 0 and acc == 0 -> clamp denom, emit 0.
        denom = jnp.maximum(l_scr[...], 1e-30)
        ctx_scr[h] = acc_scr[...] * pl.reciprocal(denom, approx=True)

    @pl.when(jnp.logical_and(h == n_head - 1, kj == n_k - 1))
    def _finalize_out():
        # One full-contraction output projection for all heads.
        ctx2d = jnp.concatenate([ctx_scr[hh] for hh in range(n_head)], axis=-1)
        out_ref[0] = (jnp.dot(ctx2d.astype(jnp.bfloat16), wo_ref[...],
                              preferred_element_type=jnp.float32) + bo_ref[...])


def multi_headed_attention(query, key, value, mask, params, n_head):
    """Pallas implementation of MultiHeadedAttention.forward (empty-cache path).

    query: (B, T1, F); key/value: (B, T2, F); mask: (B, 1, T2) or (B, T1, T2),
    nonzero == keep. Returns (out (B, T1, F), new_cache (B, H, T2, 2*d_k)).
    """
    wq, bq, wk, bk, wv, bv, wo, bo = params
    B, T1, F = query.shape
    T2 = key.shape[1]
    assert F % n_head == 0
    d_k = F // n_head

    # ---- host-side one-time weight re-layouts + bf16 casts ----
    wq_t = wq.T.astype(jnp.bfloat16)                 # (F, F)
    wk_t = wk.T.astype(jnp.bfloat16)                 # (F, F)
    wv_t = wv.T.astype(jnp.bfloat16)                 # (F, F)
    wo_t = wo.T.astype(jnp.bfloat16)                 # (F, F)
    bq2 = bq.reshape(1, F).astype(jnp.float32)
    bk2 = bk.reshape(1, F).astype(jnp.float32)
    bv2 = bv.reshape(1, F).astype(jnp.float32)
    bo2 = bo.reshape(1, F).astype(jnp.float32)

    # compact int8 mask in its ORIGINAL shape (no (B, T1, T2) float broadcast)
    mask_i = (mask != 0).astype(jnp.int8)
    Tm = mask_i.shape[1]                             # 1 or T1

    q_blk = _pick_block(T1, 256)
    k_blk = _pick_block(T2, 512)
    n_q = T1 // q_blk
    n_k = T2 // k_blk

    vmem_limit = 32 * 1024 * 1024   # safe on v5e / v6e / v7x

    # ---- Kernel A: K/V projection -> per-head planes (B, H, T2, d_k) ----
    k_cache, v_cache = pl.pallas_call(
        functools.partial(_kv_proj_kernel, n_head=n_head, d_k=d_k),
        grid=(B, n_k),
        in_specs=[
            pl.BlockSpec((1, k_blk, F), lambda b, kj: (b, kj, 0)),    # key
            pl.BlockSpec((1, k_blk, F), lambda b, kj: (b, kj, 0)),    # value
            pl.BlockSpec((F, F), lambda b, kj: (0, 0)),               # Wk^T (bf16)
            pl.BlockSpec((1, F), lambda b, kj: (0, 0)),               # bk
            pl.BlockSpec((F, F), lambda b, kj: (0, 0)),               # Wv^T (bf16)
            pl.BlockSpec((1, F), lambda b, kj: (0, 0)),               # bv
        ],
        out_specs=(
            pl.BlockSpec((1, n_head, k_blk, d_k), lambda b, kj: (b, 0, kj, 0)),
            pl.BlockSpec((1, n_head, k_blk, d_k), lambda b, kj: (b, 0, kj, 0)),
        ),
        out_shape=(
            jax.ShapeDtypeStruct((B, n_head, T2, d_k), jnp.float32),
            jax.ShapeDtypeStruct((B, n_head, T2, d_k), jnp.float32),
        ),
        compiler_params=pltpu.CompilerParams(
            dimension_semantics=("parallel", "parallel"),
            vmem_limit_bytes=vmem_limit),
    )(key, value, wk_t, bk2, wv_t, bv2)

    # ---- Kernel B: flash attention + output projection ----
    if Tm == 1:
        mask_spec = pl.BlockSpec((1, 1, k_blk), lambda b, qi, h, kj: (b, 0, kj))
    else:
        mask_spec = pl.BlockSpec((1, q_blk, k_blk), lambda b, qi, h, kj: (b, qi, kj))

    out = pl.pallas_call(
        functools.partial(_flash_attn_kernel, n_head=n_head, d_k=d_k,
                          scale=1.0 / math.sqrt(d_k)),
        grid=(B, n_q, n_head, n_k),
        in_specs=[
            pl.BlockSpec((1, q_blk, F), lambda b, qi, h, kj: (b, qi, 0)),       # query
            mask_spec,                                                          # mask
            pl.BlockSpec((1, 1, k_blk, d_k), lambda b, qi, h, kj: (b, h, kj, 0)),  # K
            pl.BlockSpec((1, 1, k_blk, d_k), lambda b, qi, h, kj: (b, h, kj, 0)),  # V
            pl.BlockSpec((F, F), lambda b, qi, h, kj: (0, 0)),                  # Wq^T
            pl.BlockSpec((1, F), lambda b, qi, h, kj: (0, 0)),                  # bq
            pl.BlockSpec((F, F), lambda b, qi, h, kj: (0, 0)),                  # Wo^T
            pl.BlockSpec((1, F), lambda b, qi, h, kj: (0, 0)),                  # bo
        ],
        out_specs=pl.BlockSpec((1, q_blk, F), lambda b, qi, h, kj: (b, qi, 0)),
        out_shape=jax.ShapeDtypeStruct((B, T1, F), jnp.float32),
        scratch_shapes=[
            pltpu.VMEM((n_head, q_blk, d_k), jnp.bfloat16),  # per-head projected q
            pltpu.VMEM((q_blk, 1), jnp.float32),             # running max  m
            pltpu.VMEM((q_blk, 1), jnp.float32),             # running sum  l
            pltpu.VMEM((q_blk, d_k), jnp.float32),           # running context acc
            pltpu.VMEM((n_head, q_blk, d_k), jnp.float32),   # per-head final context
        ],
        compiler_params=pltpu.CompilerParams(
            dimension_semantics=("parallel", "parallel", "arbitrary", "arbitrary"),
            vmem_limit_bytes=vmem_limit),
    )(query, mask_i, k_cache, v_cache, wq_t, bq2, wo_t, bo2)

    # torch-layout cache (B, H, T2, 2*d_k): one host-side relayout, not per tile.
    new_cache = jnp.concatenate([k_cache, v_cache], axis=-1)
    return out, new_cache


def reference(query, key, value, mask, params, n_head):
    """Plain-JAX f32 reference mirroring the torch module (eval mode, empty cache)."""
    wq, bq, wk, bk, wv, bv, wo, bo = params
    B, T1, F = query.shape
    d_k = F // n_head

    def proj(x, w, b):
        y = x @ w.T + b
        return y.reshape(B, -1, n_head, d_k).transpose(0, 2, 1, 3)

    q = proj(query, wq, bq)
    k = proj(key, wk, bk)
    v = proj(value, wv, bv)
    scores = jnp.einsum('bhtd,bhsd->bhts', q, k) / math.sqrt(d_k)
    inv = (mask[:, None, :, :] == 0)
    inv = jnp.broadcast_to(inv, scores.shape)
    scores = jnp.where(inv, -jnp.inf, scores)
    attn = jax.nn.softmax(scores, axis=-1)
    attn = jnp.where(inv, 0.0, attn)
    x = jnp.einsum('bhts,bhsd->bhtd', attn, v)
    x = x.transpose(0, 2, 1, 3).reshape(B, T1, F)
    out = x @ wo.T + bo
    new_cache = jnp.concatenate([k, v], axis=-1)
    return out, new_cache


if __name__ == "__main__":
    B, T, F, H = 2, 8, 32, 4        # batch, time1==time2, n_feat, n_head
    key0 = jax.random.PRNGKey(0)
    ks = jax.random.split(key0, 12)

    query = jax.random.normal(ks[0], (B, T, F), jnp.float32)
    keyt = jax.random.normal(ks[1], (B, T, F), jnp.float32)
    value = jax.random.normal(ks[2], (B, T, F), jnp.float32)

    # Padding mask (#batch, 1, time2): last two frames of batch 1 are padding.
    mask = jnp.ones((B, 1, T), jnp.float32).at[1, 0, -2:].set(0.0)

    # Deterministic parameter init (torch Linear shapes: weight (F, F), bias (F,)).
    scale = 0.05
    wq = scale * jax.random.normal(ks[3], (F, F), jnp.float32)
    bq = scale * jax.random.normal(ks[4], (F,), jnp.float32)
    wk = scale * jax.random.normal(ks[5], (F, F), jnp.float32)
    bk = scale * jax.random.normal(ks[6], (F,), jnp.float32)
    wv = scale * jax.random.normal(ks[7], (F, F), jnp.float32)
    bv = scale * jax.random.normal(ks[8], (F,), jnp.float32)
    wo = scale * jax.random.normal(ks[9], (F, F), jnp.float32)
    bo = scale * jax.random.normal(ks[10], (F,), jnp.float32)
    params = (wq, bq, wk, bk, wv, bv, wo, bo)

    out, new_cache = multi_headed_attention(query, keyt, value, mask, params, H)
    jax.block_until_ready((out, new_cache))

    out_ref, cache_ref = reference(query, keyt, value, mask, params, H)
    assert out.shape == (B, T, F) and new_cache.shape == (B, H, T, 2 * (F // H))
    # Tolerances reflect bf16 MXU operands (f32 accumulation) vs the pure-f32 reference.
    assert jnp.allclose(out, out_ref, atol=2e-2, rtol=2e-2)
    assert jnp.allclose(new_cache, cache_ref, atol=2e-2, rtol=2e-2)

    print("KERNEL_OK")
</pallas_src>

<mosaic_0001>
module attributes {stable_mosaic.version = 11 : i64} {
  func.func @_kv_proj_kernel(%arg0: i32, %arg1: i32, %arg2: memref<1x8x32xf32, #tpu.memory_space<vmem>>, %arg3: memref<1x8x32xf32, #tpu.memory_space<vmem>>, %arg4: memref<32x32xbf16, #tpu.memory_space<vmem>>, %arg5: memref<1x32xf32, #tpu.memory_space<vmem>>, %arg6: memref<32x32xbf16, #tpu.memory_space<vmem>>, %arg7: memref<1x32xf32, #tpu.memory_space<vmem>>, %arg8: memref<1x4x8x8xf32, #tpu.memory_space<vmem>>, %arg9: memref<1x4x8x8xf32, #tpu.memory_space<vmem>>) attributes {dimension_semantics = [#tpu.dimension_semantics<parallel>, #tpu.dimension_semantics<parallel>], iteration_bounds = array<i64: 2, 1>, scalar_prefetch = 0 : i64, scratch_operands = 0 : i64, tpu.core_type = #tpu.core_type<tc>, window_params = [{transform_indices = @transform_0, window_bounds = array<i64: 1, 8, 32>}, {transform_indices = @transform_1, window_bounds = array<i64: 1, 8, 32>}, {pipeline_mode = #tpu.pipeline_mode<synchronous>, transform_indices = @transform_2, window_bounds = array<i64: 32, 32>}, {pipeline_mode = #tpu.pipeline_mode<synchronous>, transform_indices = @transform_3, window_bounds = array<i64: 1, 32>}, {pipeline_mode = #tpu.pipeline_mode<synchronous>, transform_indices = @transform_4, window_bounds = array<i64: 32, 32>}, {pipeline_mode = #tpu.pipeline_mode<synchronous>, transform_indices = @transform_5, window_bounds = array<i64: 1, 32>}, {transform_indices = @transform_6, window_bounds = array<i64: 1, 4, 8, 8>}, {transform_indices = @transform_7, window_bounds = array<i64: 1, 4, 8, 8>}]} {
    %c0 = arith.constant 0 : index
    %c0_0 = arith.constant 0 : index
    %c0_1 = arith.constant 0 : index
    %0 = vector.load %arg2[%c0, %c0_0, %c0_1] : memref<1x8x32xf32, #tpu.memory_space<vmem>>, vector<1x8x32xf32>
    %1 = vector.shape_cast %0 : vector<1x8x32xf32> to vector<8x32xf32>
    %2 = arith.truncf %1 : vector<8x32xf32> to vector<8x32xbf16>
    %c0_2 = arith.constant 0 : index
    %c0_3 = arith.constant 0 : index
    %3 = vector.load %arg4[%c0_2, %c0_3] : memref<32x32xbf16, #tpu.memory_space<vmem>>, vector<32x32xbf16>
    %cst = arith.constant dense<0.000000e+00> : vector<8x32xf32>
    %4 = tpu.matmul %2, %3, %cst {dimension_numbers = #tpu.dot_dimension_numbers<[1], [0], [0], [1], [0, 0, 1, 1], [], []>} : vector<8x32xbf16>, vector<32x32xbf16>, vector<8x32xf32> -> vector<8x32xf32>
    %c0_4 = arith.constant 0 : index
    %c0_5 = arith.constant 0 : index
    %5 = vector.load %arg5[%c0_4, %c0_5] : memref<1x32xf32, #tpu.memory_space<vmem>>, vector<1x32xf32>
    %6 = vector.broadcast %5 : vector<1x32xf32> to vector<8x32xf32>
    %7 = arith.addf %4, %6 : vector<8x32xf32>
    %c0_6 = arith.constant 0 : index
    %c0_7 = arith.constant 0 : index
    %c0_8 = arith.constant 0 : index
    %8 = vector.load %arg3[%c0_6, %c0_7, %c0_8] : memref<1x8x32xf32, #tpu.memory_space<vmem>>, vector<1x8x32xf32>
    %9 = vector.shape_cast %8 : vector<1x8x32xf32> to vector<8x32xf32>
    %10 = arith.truncf %9 : vector<8x32xf32> to vector<8x32xbf16>
    %c0_9 = arith.constant 0 : index
    %c0_10 = arith.constant 0 : index
    %11 = vector.load %arg6[%c0_9, %c0_10] : memref<32x32xbf16, #tpu.memory_space<vmem>>, vector<32x32xbf16>
    %cst_11 = arith.constant dense<0.000000e+00> : vector<8x32xf32>
    %12 = tpu.matmul %10, %11, %cst_11 {dimension_numbers = #tpu.dot_dimension_numbers<[1], [0], [0], [1], [0, 0, 1, 1], [], []>} : vector<8x32xbf16>, vector<32x32xbf16>, vector<8x32xf32> -> vector<8x32xf32>
    %c0_12 = arith.constant 0 : index
    %c0_13 = arith.constant 0 : index
    %13 = vector.load %arg7[%c0_12, %c0_13] : memref<1x32xf32, #tpu.memory_space<vmem>>, vector<1x32xf32>
    %14 = vector.broadcast %13 : vector<1x32xf32> to vector<8x32xf32>
    %15 = arith.addf %12, %14 : vector<8x32xf32>
    %16 = vector.extract_strided_slice %7 {offsets = [0, 0], sizes = [8, 8], strides = [1, 1]} : vector<8x32xf32> to vector<8x8xf32>
    %c0_14 = arith.constant 0 : index
    %c0_15 = arith.constant 0 : index
    %c0_16 = arith.constant 0 : index
    %c0_17 = arith.constant 0 : index
    %17 = vector.load %arg8[%c0_14, %c0_15, %c0_16, %c0_17] : memref<1x4x8x8xf32, #tpu.memory_space<vmem>>, vector<1x1x8x8xf32>
    %18 = vector.shape_cast %17 : vector<1x1x8x8xf32> to vector<8x8xf32>
    %19 = vector.shape_cast %16 : vector<8x8xf32> to vector<1x1x8x8xf32>
    tpu.vector_store %arg8[%c0_14, %c0_15, %c0_16, %c0_17], %19 {strides = array<i32>} : memref<1x4x8x8xf32, #tpu.memory_space<vmem>>, vector<1x1x8x8xf32>,
    %20 = vector.extract_strided_slice %15 {offsets = [0, 0], sizes = [8, 8], strides = [1, 1]} : vector<8x32xf32> to vector<8x8xf32>
    %c0_18 = arith.constant 0 : index
    %c0_19 = arith.constant 0 : index
    %c0_20 = arith.constant 0 : index
    %c0_21 = arith.constant 0 : index
    %21 = vector.load %arg9[%c0_18, %c0_19, %c0_20, %c0_21] : memref<1x4x8x8xf32, #tpu.memory_space<vmem>>, vector<1x1x8x8xf32>
    %22 = vector.shape_cast %21 : vector<1x1x8x8xf32> to vector<8x8xf32>
    %23 = vector.shape_cast %20 : vector<8x8xf32> to vector<1x1x8x8xf32>
    tpu.vector_store %arg9[%c0_18, %c0_19, %c0_20, %c0_21], %23 {strides = array<i32>} : memref<1x4x8x8xf32, #tpu.memory_space<vmem>>, vector<1x1x8x8xf32>,
    %24 = vector.extract_strided_slice %7 {offsets = [0, 8], sizes = [8, 8], strides = [1, 1]} : vector<8x32xf32> to vector<8x8xf32>
    %c0_22 = arith.constant 0 : index
    %c1 = arith.constant 1 : index
    %c0_23 = arith.constant 0 : index
    %c0_24 = arith.constant 0 : index
    %25 = vector.load %arg8[%c0_22, %c1, %c0_23, %c0_24] : memref<1x4x8x8xf32, #tpu.memory_space<vmem>>, vector<1x1x8x8xf32>
    %26 = vector.shape_cast %25 : vector<1x1x8x8xf32> to vector<8x8xf32>
    %27 = vector.shape_cast %24 : vector<8x8xf32> to vector<1x1x8x8xf32>
    tpu.vector_store %arg8[%c0_22, %c1, %c0_23, %c0_24], %27 {strides = array<i32>} : memref<1x4x8x8xf32, #tpu.memory_space<vmem>>, vector<1x1x8x8xf32>,
    %28 = vector.extract_strided_slice %15 {offsets = [0, 8], sizes = [8, 8], strides = [1, 1]} : vector<8x32xf32> to vector<8x8xf32>
    %c0_25 = arith.constant 0 : index
    %c1_26 = arith.constant 1 : index
    %c0_27 = arith.constant 0 : index
    %c0_28 = arith.constant 0 : index
    %29 = vector.load %arg9[%c0_25, %c1_26, %c0_27, %c0_28] : memref<1x4x8x8xf32, #tpu.memory_space<vmem>>, vector<1x1x8x8xf32>
    %30 = vector.shape_cast %29 : vector<1x1x8x8xf32> to vector<8x8xf32>
    %31 = vector.shape_cast %28 : vector<8x8xf32> to vector<1x1x8x8xf32>
    tpu.vector_store %arg9[%c0_25, %c1_26, %c0_27, %c0_28], %31 {strides = array<i32>} : memref<1x4x8x8xf32, #tpu.memory_space<vmem>>, vector<1x1x8x8xf32>,
    %32 = vector.extract_strided_slice %7 {offsets = [0, 16], sizes = [8, 8], strides = [1, 1]} : vector<8x32xf32> to vector<8x8xf32>
    %c0_29 = arith.constant 0 : index
    %c2 = arith.constant 2 : index
    %c0_30 = arith.constant 0 : index
    %c0_31 = arith.constant 0 : index
    %33 = vector.load %arg8[%c0_29, %c2, %c0_30, %c0_31] : memref<1x4x8x8xf32, #tpu.memory_space<vmem>>, vector<1x1x8x8xf32>
    %34 = vector.shape_cast %33 : vector<1x1x8x8xf32> to vector<8x8xf32>
    %35 = vector.shape_cast %32 : vector<8x8xf32> to vector<1x1x8x8xf32>
    tpu.vector_store %arg8[%c0_29, %c2, %c0_30, %c0_31], %35 {strides = array<i32>} : memref<1x4x8x8xf32, #tpu.memory_space<vmem>>, vector<1x1x8x8xf32>,
    %36 = vector.extract_strided_slice %15 {offsets = [0, 16], sizes = [8, 8], strides = [1, 1]} : vector<8x32xf32> to vector<8x8xf32>
    %c0_32 = arith.constant 0 : index
    %c2_33 = arith.constant 2 : index
    %c0_34 = arith.constant 0 : index
    %c0_35 = arith.constant 0 : index
    %37 = vector.load %arg9[%c0_32, %c2_33, %c0_34, %c0_35] : memref<1x4x8x8xf32, #tpu.memory_space<vmem>>, vector<1x1x8x8xf32>
    %38 = vector.shape_cast %37 : vector<1x1x8x8xf32> to vector<8x8xf32>
    %39 = vector.shape_cast %36 : vector<8x8xf32> to vector<1x1x8x8xf32>
    tpu.vector_store %arg9[%c0_32, %c2_33, %c0_34, %c0_35], %39 {strides = array<i32>} : memref<1x4x8x8xf32, #tpu.memory_space<vmem>>, vector<1x1x8x8xf32>,
    %40 = vector.extract_strided_slice %7 {offsets = [0, 24], sizes = [8, 8], strides = [1, 1]} : vector<8x32xf32> to vector<8x8xf32>
    %c0_36 = arith.constant 0 : index
    %c3 = arith.constant 3 : index
    %c0_37 = arith.constant 0 : index
    %c0_38 = arith.constant 0 : index
    %41 = vector.load %arg8[%c0_36, %c3, %c0_37, %c0_38] : memref<1x4x8x8xf32, #tpu.memory_space<vmem>>, vector<1x1x8x8xf32>
    %42 = vector.shape_cast %41 : vector<1x1x8x8xf32> to vector<8x8xf32>
    %43 = vector.shape_cast %40 : vector<8x8xf32> to vector<1x1x8x8xf32>
    tpu.vector_store %arg8[%c0_36, %c3, %c0_37, %c0_38], %43 {strides = array<i32>} : memref<1x4x8x8xf32, #tpu.memory_space<vmem>>, vector<1x1x8x8xf32>,
    %44 = vector.extract_strided_slice %15 {offsets = [0, 24], sizes = [8, 8], strides = [1, 1]} : vector<8x32xf32> to vector<8x8xf32>
    %c0_39 = arith.constant 0 : index
    %c3_40 = arith.constant 3 : index
    %c0_41 = arith.constant 0 : index
    %c0_42 = arith.constant 0 : index
    %45 = vector.load %arg9[%c0_39, %c3_40, %c0_41, %c0_42] : memref<1x4x8x8xf32, #tpu.memory_space<vmem>>, vector<1x1x8x8xf32>
    %46 = vector.shape_cast %45 : vector<1x1x8x8xf32> to vector<8x8xf32>
    %47 = vector.shape_cast %44 : vector<8x8xf32> to vector<1x1x8x8xf32>
    tpu.vector_store %arg9[%c0_39, %c3_40, %c0_41, %c0_42], %47 {strides = array<i32>} : memref<1x4x8x8xf32, #tpu.memory_space<vmem>>, vector<1x1x8x8xf32>,
    return
  }
  func.func @transform_0(%arg0: i32, %arg1: i32) -> (i32, i32, i32) {
    %c0_i32 = arith.constant 0 : i32
    %c0_i32_0 = arith.constant 0 : i32
    return %arg0, %arg1, %c0_i32 : i32, i32, i32
  }
  func.func @transform_1(%arg0: i32, %arg1: i32) -> (i32, i32, i32) {
    %c0_i32 = arith.constant 0 : i32
    %c0_i32_0 = arith.constant 0 : i32
    return %arg0, %arg1, %c0_i32 : i32, i32, i32
  }
  func.func @transform_2(%arg0: i32, %arg1: i32) -> (i32, i32) {
    %c0_i32 = arith.constant 0 : i32
    %c0_i32_0 = arith.constant 0 : i32
    %c0_i32_1 = arith.constant 0 : i32
    return %c0_i32, %c0_i32_0 : i32, i32
  }
  func.func @transform_3(%arg0: i32, %arg1: i32) -> (i32, i32) {
    %c0_i32 = arith.constant 0 : i32
    %c0_i32_0 = arith.constant 0 : i32
    %c0_i32_1 = arith.constant 0 : i32
    return %c0_i32, %c0_i32_0 : i32, i32
  }
  func.func @transform_4(%arg0: i32, %arg1: i32) -> (i32, i32) {
    %c0_i32 = arith.constant 0 : i32
    %c0_i32_0 = arith.constant 0 : i32
    %c0_i32_1 = arith.constant 0 : i32
    return %c0_i32, %c0_i32_0 : i32, i32
  }
  func.func @transform_5(%arg0: i32, %arg1: i32) -> (i32, i32) {
    %c0_i32 = arith.constant 0 : i32
    %c0_i32_0 = arith.constant 0 : i32
    %c0_i32_1 = arith.constant 0 : i32
    return %c0_i32, %c0_i32_0 : i32, i32
  }
  func.func @transform_6(%arg0: i32, %arg1: i32) -> (i32, i32, i32, i32) {
    %c0_i32 = arith.constant 0 : i32
    %c0_i32_0 = arith.constant 0 : i32
    %c0_i32_1 = arith.constant 0 : i32
    return %arg0, %c0_i32, %arg1, %c0_i32_0 : i32, i32, i32, i32
  }
  func.func @transform_7(%arg0: i32, %arg1: i32) -> (i32, i32, i32, i32) {
    %c0_i32 = arith.constant 0 : i32
    %c0_i32_0 = arith.constant 0 : i32
    %c0_i32_1 = arith.constant 0 : i32
    return %arg0, %c0_i32, %arg1, %c0_i32_0 : i32, i32, i32, i32
  }
}

</mosaic_0001>

<bundles_post_ra>
// kernel: tpu_custom_call.1
= control target key start
LH: loop header
LB: loop body
LE: loop exit
PB: predicated region body
PF: predicated region fallthrough
CT: control target
= control target key end

     0   :  { %s1577_s0 = inlined_call_operand.hbm [shape: f32[2,8,32], index: 0, kind: input, shape index: {}]   ;;  %s1578_s1 = inlined_call_operand.hbm [shape: f32[2,8,32], index: 1, kind: input, shape index: {}]   ;;  %s1579_s2 = inlined_call_operand.hbm [shape: bf16[32,32], index: 2, kind: input, shape index: {}]   ;;  %s1580_s3 = inlined_call_operand.vmem [shape: f32[1,32], index: 3, kind: input, shape index: {}]   ;;  %s1581_s4 = inlined_call_operand.hbm [shape: bf16[32,32], index: 4, kind: input, shape index: {}]   ;;  %s1582_s5 = inlined_call_operand.vmem [shape: f32[1,32], index: 5, kind: input, shape index: {}]   ;;  %s1583_s6 = inlined_call_operand.hbm [shape: f32[2,4,8,8], index: 6, kind: output, shape index: {0}]   ;;  %s1584_s7 = inlined_call_operand.hbm [shape: f32[2,4,8,8], index: 7, kind: output, shape index: {1}]  }
   0x1   :  { %1592 = sst [smem:[#allocation23_spill]] %s1579_s2 }
   0x2   :  { %1593 = sst [smem:[#allocation24_spill]] %s1581_s4 }
   0x3   :  { %13 = vsyncpa [#allocation3], 0 }
   0x4   :  { %15 = vsyncpa [#allocation3 + $0x1], 0 }
   0x5   :  { %16 = vsyncpa [#allocation6], 0 }
   0x6   :  { %18 = vsyncpa [#allocation6 + $0x1], 0 }
   0x7   :  { %19 = vsyncpa [#allocation9], 0 }
   0x8   :  { %20 = vsyncpa [#allocation4], 0 }
   0x9   :  { %22 = vsyncpa [#allocation4 + $0x1], 0 }
   0xa   :  { %23 = vsyncpa [#allocation12], 0 }
   0xb   :  { %25 = vsyncpa [#allocation12 + $0x1], 0  ;;  %s1232_s24 = smov 0   ;;  %s1234_s25 = smov 0  }
   0xc   :  { %s1236_s26 = smov 0   ;;  %s1238_s27 = smov 0  }
   0xd   :  { %s1240_s28 = smov 0   ;;  %s1242_s29 = smov 0  }
   0xe LB: > { %1594 = sst [smem:[#allocation19_spill]] %s1171_s28  ;;  %s1263_s30 = sadd.s32 4294967295, %s1175_s29   ;;  %s1175_s29 = sphi %s1242_s29, %s31_s29   ;;  %s1171_s28 = sphi %s1240_s28, %s1619_s28   ;;  %s1167_s27 = sphi %s1238_s27, %s1618_s27   ;;  %s1163_s26 = sphi %s1236_s26, %s1622_s26   ;;  %s1159_s25 = sphi %s1234_s25, %s1621_s25   ;;  %s1155_s24 = sphi %s1232_s24, %s1620_s24  }
   0xf   : > { %s765_s8 = sadd.s32 4294967294, %s1175_s29   ;;  %p65_p0 = scmp.ne.s32.totalorder %s1159_s25, %s1155_s24 }
  0x10   : > { %p1585_p1 = scmp.eq.s32.totalorder %s1263_s30, 0  ;;  %p209_p3 = scmp.eq.s32.totalorder %s765_s8, 1 }
  0x11   : > { %p766_p5 = scmp.ge.s32.totalorder %s1175_s29, 1  ;;  %p244_p7 = scmp.lt.s32.totalorder %s1175_s29, 3 }
  0x12   : > { %p1272_p4 = por %p1585_p1, %p65_p0  ;;  %p1277_p6 = por %p209_p3, %p65_p0 }
  0x13   : > { %p1282_p8 = pnand %p766_p5, %p244_p7  ;;  %s1177_s12 = smov [#allocation7]  }
  0x14   : > { %s1595_s9 = scalar_select %p1272_p4, 1, 0 }
  0x15   : > { %s1596_s10 = scalar_select %p1277_p6, 1, 0 }
  0x16   : > { %s1598_s11 = scalar_select %p1282_p8, 1, 0 }
  0x17   : > { %1597 = sst [smem:[#allocation20_spill]] %s1596_s10  ;;  %s256_s13 = sshll.u32 %s1177_s12, 4  ;;  %s1286_s13 = int_to_ptr.vmem [resolvable:$true] %s256_s13 }
  0x18   : > { %p843_p9 = pneg %p1282_p8  ;;  %s1178_s15 = smov [#allocation8]  }
  0x19   : > { %s272_s16 = sshll.u32 %s1178_s15, 4  ;;  %s1600_s2 = sld [smem:[#allocation23_spill]]  ;;  %s1297_s16 = int_to_ptr.vmem [resolvable:$true] %s272_s16 }
  0x1a   : > { %p1293_p11 = pnand %p843_p9, %p1585_p1 }
  0x1c   : > { %p935_p13 = pneg %p1293_p11 }
  0x1f   : > { %s933_s19 = scalar_lea.hbm %s1600_s2, 256 }
  0x20   : > { %p934_p12 = scmp.ne.s32.totalorder %s1600_s2, %s933_s19  ;;  %p940_p5 = scmp.lt.u32.totalorder %s933_s19, %s1600_s2 }
  0x22   : > { %p936_p0 = pnand %p935_p13, %p934_p12 }
  0x24   : > { %p937_p3 = pneg %p936_p0 }
  0x26   : > { %p942_p7 = pnand %p940_p5, %p937_p3 }
  0x28   : > { %945 = shalt.err (!%p942_p7)
}
  0x29   : > { %s946_s8 = scalar_lea.vmem %s1286_s13, 256  ;;  %p954_p2 = scmp.lt.s32.totalorder %s1286_s13, %s1286_s13 }
  0x2a   : > { %p947_p9 = scmp.ne.s32.totalorder %s1286_s13, %s946_s8  ;;  %p955_p12 = scmp.lt.s32.totalorder %s946_s8, %s946_s8 }
  0x2c   : > { %p949_p10 = pnand %p947_p9, %p935_p13  ;;  %p956_p0 = por %p955_p12, %p954_p2 }
  0x2e   : > { %p950_p1 = pneg %p949_p10 }
  0x30   : > { %p957_p6 = pnand %p956_p0, %p950_p1 }
  0x32   : > { %960 = shalt.err (!%p957_p6)
}
  0x33   : > { %s1179_s12 = smov 64   ;;  %s1180_s15 = smov 4  }
  0x34   : > { %846 = dma.hbm_to_vmem [thread:$0]  (!%p1293_p11), %s1600_s2, 256, %s1286_s13, [#allocation6], %s1179_s12, %s1179_s12, %s1180_s15  }
  0x35   : > { %s1601_s4 = sld [smem:[#allocation24_spill]] }
  0x3b   : > { %s961_s21 = scalar_lea.hbm %s1601_s4, 256 }
  0x3c   : > { %p962_p2 = scmp.ne.s32.totalorder %s1601_s4, %s961_s21  ;;  %p968_p10 = scmp.lt.u32.totalorder %s961_s21, %s1601_s4 }
  0x3e   : > { %p964_p1 = pnand %p962_p2, %p935_p13 }
  0x40   : > { %p965_p6 = pneg %p964_p1 }
  0x42   : > { %p970_p3 = pnand %p968_p10, %p965_p6 }
  0x44   : > { %973 = shalt.err (!%p970_p3)
}
  0x45   : > { %s974_s13 = scalar_lea.vmem %s1297_s16, 256  ;;  %p982_p12 = scmp.lt.s32.totalorder %s1297_s16, %s1297_s16 }
  0x46   : > { %p975_p5 = scmp.ne.s32.totalorder %s1297_s16, %s974_s13  ;;  %p983_p0 = scmp.lt.s32.totalorder %s974_s13, %s974_s13 }
  0x48   : > { %p977_p7 = pnand %p975_p5, %p935_p13  ;;  %p984_p2 = por %p983_p0, %p982_p12 }
  0x4a   : > { %p978_p9 = pneg %p977_p7 }
  0x4c   : > { %p985_p1 = pnand %p984_p2, %p978_p9 }
  0x4e   : > { %988 = shalt.err (!%p985_p1)
}
  0x4f   : > { %849 = dma.hbm_to_vmem [thread:$0]  (!%p1293_p11), %s1601_s4, 256, %s1297_s16, [#allocation9], %s1179_s12, %s1179_s12, %s1180_s15  }
  0x50   : > { %s43_s18 = sadd.s32 1, %s1171_s28  ;;  %s52_s19 = sadd.s32 1, %s1163_s26 }
  0x51   : > { %p45_p13 = scmp.ge.s32.totalorder %s43_s18, 2  ;;  %p59_p6 = scmp.ne.s32.totalorder %s1163_s26, %s1159_s25 }
  0x52   : > { %p60_p10 = scmp.eq.s32.totalorder %s1175_s29, 0  ;;  %p866_p3 = scmp.lt.s32.totalorder %s1175_s29, 2 }
  0x53   : > { %s1624_s18 = smov (%p45_p13, %s43_s18), 0  ;;  %p1603_p7 = scmp.eq.s32.totalorder %s1263_s30, 1 }
  0x54   : > { %1602 = sst [smem:[#allocation21_spill]] %s1624_s18  ;;  %p61_p5 = por %p60_p10, %p59_p6 }
  0x55   : > { %p1361_p9 = por %p1603_p7, %p59_p6  ;;  %s47_s20 = ssub.s32 %s1171_s28, %s1624_s18 }
  0x56   : > { %s289_s21 = sand.u32 1, %s1163_s26   ;;  %p50_p12 = scmp.eq.s32.totalorder %s47_s20, 0 }
  0x57   : > { %s1604_s14 = scalar_select %p1361_p9, 1, 0 }
  0x58   : > { %s1368_s16 = sshll.u32 %s289_s21, 3  ;;  %s771_s12 = sshll.u32 %s1171_s28, 7 }
  0x59   : > { %s1372_s15 = scalar_select %p50_p12, %s1163_s26, %s52_s19  }
  0x5a   : > { %s1377_s8 = scalar_lea.hbm %s1577_s0, %s771_s12  ;;  %s293_s13 = scalar_lea.vmem [#allocation2], %s1368_s16 }
  0x5b   : > { %1605 = sst [smem:[#allocation22_spill]] %s1372_s15  ;;  %s301_s10 = sshll.u32 %s293_s13, 4  ;;  %s1386_s10 = int_to_ptr.vmem [resolvable:$true] %s301_s10 }
  0x5c   : > { %p1382_p11 = pnand %p866_p3, %p61_p5  ;;  %s1391_s22 = scalar_lea.hbm %s1578_s1, %s771_s12 }
  0x5d   : > { %s290_s23 = scalar_lea.sflag [#allocation3], %s289_s21  ;;  %s989_s2 = scalar_lea.hbm %s1377_s8, 128 }
  0x5e   : > { %p990_p0 = scmp.ne.s32.totalorder %s1377_s8, %s989_s2  ;;  %p991_p2 = pneg %p1382_p11 }
  0x5f   : > { %s994_s18 = scalar_lea.hbm %s1577_s0, 256  ;;  %p995_p6 = scmp.lt.u32.totalorder %s1377_s8, %s1577_s0 }
  0x60   : > { %p992_p1 = pnand %p991_p2, %p990_p0  ;;  %p996_p10 = scmp.lt.u32.totalorder %s994_s18, %s989_s2 }
  0x61   : > { %p998_p5 = scmp.lt.u32.totalorder %s989_s2, %s1377_s8 }
  0x62   : > { %p993_p13 = pneg %p992_p1  ;;  %p997_p3 = por %p996_p10, %p995_p6 }
  0x64   : > { %p999_p7 = por %p998_p5, %p997_p3 }
  0x66   : > { %p1000_p12 = pnand %p999_p7, %p993_p13 }
  0x68   : > { %1003 = shalt.err (!%p1000_p12)
}
  0x69   : > { %s1004_s21 = scalar_lea.vmem %s1386_s10, 128  ;;  %s1181_s4 = smov [#allocation2]  }
  0x6a   : > { %p1005_p0 = scmp.ne.s32.totalorder %s1386_s10, %s1004_s21  ;;  %s1009_s12 = sshll.u32 %s1181_s4, 4  ;;  %s1010_s12 = int_to_ptr.vmem [resolvable:$false] %s1009_s12 }
  0x6b   : > { %s1011_s28 = scalar_lea.vmem %s1010_s12, 256  ;;  %p1012_p4 = scmp.lt.s32.totalorder %s1386_s10, %s1010_s12 }
  0x6c   : > { %p1007_p1 = pnand %p1005_p0, %p991_p2  ;;  %p1013_p6 = scmp.lt.s32.totalorder %s1011_s28, %s1004_s21 }
  0x6e   : > { %p1008_p9 = pneg %p1007_p1  ;;  %p1014_p10 = por %p1013_p6, %p1012_p4 }
  0x70   : > { %p1015_p3 = pnand %p1014_p10, %p1008_p9 }
  0x72   : > { %1018 = shalt.err (!%p1015_p3)
}
  0x73   : > { %853 = dma.hbm_to_vmem [thread:$0]  (!%p1382_p11), %s1377_s8, 128, %s1386_s10, %s290_s23  }
  0x74   : > { %s308_s2 = sand.u32 1, %s1175_s29   ;;  %s312_s18 = scalar_lea.vmem [#allocation5], %s1368_s16 }
  0x75   : > { %s320_s15 = sshll.u32 %s312_s18, 4  ;;  %s309_s19 = scalar_lea.sflag [#allocation6], %s308_s2  ;;  %s321_s15 = int_to_ptr.vmem [resolvable:$true] %s320_s15 }
  0x76   : > { %s1019_s20 = scalar_lea.hbm %s1391_s22, 128  ;;  %s1024_s4 = scalar_lea.hbm %s1578_s1, 256 }
  0x77   : > { %p1020_p4 = scmp.ne.s32.totalorder %s1391_s22, %s1019_s20  ;;  %p1025_p5 = scmp.lt.u32.totalorder %s1391_s22, %s1578_s1 }
  0x78   : > { %p1026_p7 = scmp.lt.u32.totalorder %s1024_s4, %s1019_s20  ;;  %p1028_p0 = scmp.lt.u32.totalorder %s1019_s20, %s1391_s22 }
  0x79   : > { %p1022_p9 = pnand %p1020_p4, %p991_p2 }
  0x7a   : > { %p1027_p12 = por %p1026_p7, %p1025_p5 }
  0x7b   : > { %p1023_p13 = pneg %p1022_p9 }
  0x7c   : > { %p1029_p1 = por %p1028_p0, %p1027_p12 }
  0x7e   : > { %p1030_p6 = pnand %p1029_p1, %p1023_p13 }
  0x80   : > { %1033 = shalt.err (!%p1030_p6)
}
  0x81   : > { %s1034_s16 = scalar_lea.vmem %s321_s15, 128  ;;  %s1182_s8 = smov [#allocation5]  }
  0x82   : > { %p1035_p10 = scmp.ne.s32.totalorder %s321_s15, %s1034_s16  ;;  %s1039_s10 = sshll.u32 %s1182_s8, 4  ;;  %s1040_s10 = int_to_ptr.vmem [resolvable:$false] %s1039_s10 }
  0x83   : > { %s1041_s23 = scalar_lea.vmem %s1040_s10, 256  ;;  %p1042_p9 = scmp.lt.s32.totalorder %s321_s15, %s1040_s10 }
  0x84   : > { %p1037_p3 = pnand %p1035_p10, %p991_p2  ;;  %p1043_p8 = scmp.lt.s32.totalorder %s1041_s23, %s1034_s16 }
  0x86   : > { %p1038_p4 = pneg %p1037_p3  ;;  %p1044_p5 = por %p1043_p8, %p1042_p9 }
  0x88   : > { %p1045_p7 = pnand %p1044_p5, %p1038_p4 }
  0x8a   : > { %1048 = shalt.err (!%p1045_p7)
}
  0x8b   : > { %856 = dma.hbm_to_vmem [thread:$0]  (!%p1382_p11), %s1391_s22, 128, %s321_s15, %s309_s19  }
  0x8c   : > { %p1607_p13 = scmp.ne.s32.totalorder %s1598_s11, 0 }
  0x8d   : > { %s1442_s2 = sand.u32 (!%p1607_p13), 1, %s1159_s25   ;;  %p1608_p2 = scmp.ne.s32.totalorder (!%p1607_p13), %s1595_s9, 0 }
  0x8e   : > { %329 = sbr.rel (%p1607_p13) target bundleno = 544 (0x220), region = 44  ;;  %s775_s18 = sshll.u32 (!%p1607_p13), %s1442_s2, 3 }
  0x8f   : > { %s332_s20 = scalar_lea.sflag (!%p1607_p13), [#allocation3], %s1442_s2  ;;  %s335_s13 = scalar_lea.vmem (!%p1607_p13), [#allocation2], %s775_s18 }
  0x95   : > { %1130 = dma.done.wait (%p1608_p2), %s332_s20, 128  }
  0x96   : > { %1132 = vsyncadd (%p1608_p2), %s332_s20, 4294967168  ;;  %s340_s17 = sand.u32 1, %s1263_s30   ;;  %s344_s11 = scalar_lea.vmem [#allocation5], %s775_s18 }
  0x97   : > { %s341_s22 = scalar_lea.sflag [#allocation6], %s340_s17 }
  0x98   : > { %1134 = dma.done.wait (%p1608_p2), %s341_s22, 128  }
  0x99   : > { %1136 = vsyncadd (%p1608_p2), %s341_s22, 4294967168  ;;  %p1609_p8 = scmp.eq.s32.totalorder %s1263_s30, 0 }
  0x9b   : > { %1138 = dma.done.wait (%p1609_p8), [#allocation6], 256   ;;  %p1610_p11 = pmov %p1609_p8 }
  0x9c   : > { %p1611_p12 = pmov %p1609_p8 }
  0x9d   : > { %1140 = vsyncadd (%p1610_p11), [#allocation6], 4294967040 }
  0x9e   : > { %1142 = dma.done.wait (%p1611_p12), [#allocation9], 256   ;;  %p1612_p0 = pmov %p1609_p8 }
  0x9f   : > { %v1183_v0 = vmov 0.0   ;;  %vm1184_vm0 = vmmov 0   ;;  %v929_v1 = vld [vmem:[#allocation7] sm:$0xff]   ;;  %v930_v2 = vld [vmem:[#allocation8] sm:$0xff]   ;;  %v931_v3 = vld [vmem:[#allocation7 + $0x8] sm:$0xff]   ;;  %vm419_vm1 = vcmask 261120  }
  0xa0   : > { %1144 = vsyncadd (%p1612_p0), [#allocation9], 4294967040  ;;  %811 = vmatprep.subr.bf16.mxu0 %v1183_v0  ;;  %819 = vmatprep.subr.bf16.mxu1 %v1183_v0  ;;  %v932_v4 = vld [vmem:[#allocation8 + $0x8] sm:$0xff]   ;;  %v394_v5 = vld [vmem:[%s335_s13] sm:$0xff]  ;;  %s779_s30 = sshll.u32 %s1442_s2, 5  ;;  %vm531_vm2 = vcmask 64512  }
  0xa1   : > { %815 = vmatprep.mubr.msk.bf16.mxu0 %vm1184_vm0, %v1183_v0  ;;  %823 = vmatprep.mubr.msk.bf16.mxu1 %vm1184_vm0, %v1183_v0  ;;  %v463_v6 = vld [vmem:[%s344_s11] sm:$0xff]  ;;  %v395_v7 = vpack.c.bf16 %v394_v5, %v394_v5  ;;  %v781_v9 = vld [vmem:[%s1580_s3] ss:$0 sm:$0xff]  ;;  %s1470_s4 = scalar_lea.vmem [#allocation10], %s779_s30  ;;  %s1185_s12 = smov 112  }
  0xa2   : > { %812 = vmatpush3.bf16.msra.mxu0 %v929_v1  ;;  %820 = vmatpush3.bf16.msra.mxu1 %v930_v2  ;;  %v464_v8 = vpack.c.bf16 %v463_v6, %v463_v6  ;;  %v785_v10 = vld [vmem:[%s1582_s5] ss:$0 sm:$0xff]  ;;  %s1186_s28 = smov 120   ;;  %s392_s16 = scalar_lea.vmem [#allocation11], %s779_s30 }
  0xa3   : > { %813 = vmatprep.subr.bf16.mxu0 %v1183_v0  ;;  %821 = vmatprep.subr.bf16.mxu1 %v1183_v0  ;;  %s1187_s8 = smov 104   ;;  %s586_s10 = sshll.u32 %s1470_s4, 4  ;;  %s1481_s10 = int_to_ptr.vmem [resolvable:$true] %s586_s10 }
  0xa4   : > { %s603_s23 = sshll.u32 %s392_s16, 4  ;;  %s803_s18 = sshll.u32 %s1167_s27, 9  ;;  %s1483_s23 = int_to_ptr.vmem [resolvable:$true] %s603_s23 }
  0xa5   : > { %s1490_s17 = scalar_lea.hbm %s1583_s6, %s803_s18  ;;  %s1495_s11 = scalar_lea.hbm %s1584_s7, %s803_s18 }
  0xa6   : > { %814 = vmatpush3.bf16.msra.mxu0 %v931_v3  ;;  %822 = vmatpush3.bf16.msra.mxu1 %v932_v4  ;;  %s567_s30 = scalar_lea.sflag [#allocation4], %s1442_s2  ;;  %s1049_s9 = scalar_lea.vmem %s1481_s10, 512 }
  0xa7   : > { %p1050_p1 = scmp.ne.s32.totalorder %s1481_s10, %s1049_s9  ;;  %p1613_p6 = scmp.ne.s32.totalorder %s1604_s14, 0 }
  0xa8   : > { %s1188_s15 = smov [#allocation10]  }
  0xa9   : > { %816 = vmatmul.mubr.msk.bf16.vlgmr.msra.gmra.mrb[0].mxu0 %vm419_vm1, %v395_v7  ;;  %824 = vmatmul.mubr.msk.bf16.vlgmr.msra.gmra.mrb[0].mxu1 %vm419_vm1, %v464_v8  ;;  %p1051_p10 = pnand %p1050_p1, %p1613_p6  ;;  %s1053_s19 = sshll.u32 %s1188_s15, 4  ;;  %s1054_s19 = int_to_ptr.vmem [resolvable:$false] %s1053_s19 }
  0xaa   : > { %s1055_s21 = scalar_lea.vmem %s1054_s19, 1024  ;;  %p1056_p4 = scmp.lt.s32.totalorder %s1481_s10, %s1054_s19 }
  0xab   : > { %p1052_p3 = pneg %p1051_p10  ;;  %p1057_p9 = scmp.lt.s32.totalorder %s1055_s21, %s1049_s9 }
  0xad   : > { %p1058_p5 = por %p1057_p9, %p1056_p4 }
  0xaf   : > { %p1059_p7 = pnand %p1058_p5, %p1052_p3 }
 0x17c   : > { %v457_v11 = vpop.f32.mrb[0].mxu0  ;;  %v525_v14 = vpop.f32.mrb[0].mxu1 }
 0x17d   : > { %v458_v12 = vadd.f32 %v781_v9, %v457_v11  ;;  %v817_v13 = vpop.f32.mrb[1].mxu0  ;;  %v526_v15 = vadd.f32 %v785_v10, %v525_v14  ;;  %v825_v17 = vpop.f32.mrb[1].mxu1 }
 0x17e   : > { %v460_v16 = vpop.f32.mrb[2].mxu0  ;;  %v528_v18 = vpop.f32.mrb[2].mxu1 }
 0x17f   : > { %532 = vst.msk [vmem:[%s1470_s4] sm:$0xff] %vm531_vm2, %v458_v12  ;;  %546 = vrot.lane.b32.xlu1 %v458_v12, %s1185_s12  ;;  %535 = vrot.lane.b32.xlu0 %v458_v12, %s1186_s28  ;;  %v818_v19 = vpop.f32.mrb[3].mxu0  ;;  %533 = vst.msk [vmem:[%s392_s16] sm:$0xff] %vm531_vm2, %v526_v15  ;;  %v826_v20 = vpop.f32.mrb[3].mxu1 }
 0x183   : > { %551 = vrot.lane.b32.xlu1 %v526_v15, %s1185_s12  ;;  %541 = vrot.lane.b32.xlu0 %v526_v15, %s1186_s28 }
 0x187   : > { %561 = vrot.lane.b32.xlu1 %v526_v15, %s1187_s8  ;;  %556 = vrot.lane.b32.xlu0 %v458_v12, %s1187_s8 }
 0x1f1   : > { %v547_v21 = vpop.permute.xlu1 %546  ;;  %v536_v22 = vpop.permute.xlu0 %535 }
 0x1f2   : > { %791 = vst.msk [vmem:[%s1470_s4 + $0x10] sm:$0xff] %vm531_vm2, %v547_v21  ;;  %789 = vst.msk [vmem:[%s1470_s4 + $0x8] sm:$0xff] %vm531_vm2, %v536_v22 }
 0x1f5   : > { %v552_v23 = vpop.permute.xlu1 %551  ;;  %v542_v24 = vpop.permute.xlu0 %541 }
 0x1f6   : > { %792 = vst.msk [vmem:[%s392_s16 + $0x10] sm:$0xff] %vm531_vm2, %v552_v23  ;;  %790 = vst.msk [vmem:[%s392_s16 + $0x8] sm:$0xff] %vm531_vm2, %v542_v24 }
 0x1f9   : > { %v562_v25 = vpop.permute.xlu1 %561  ;;  %v557_v26 = vpop.permute.xlu0 %556 }
 0x1fa   : > { %794 = vst.msk [vmem:[%s392_s16 + $0x18] sm:$0xff] %vm531_vm2, %v562_v25  ;;  %793 = vst.msk [vmem:[%s1470_s4 + $0x18] sm:$0xff] %vm531_vm2, %v557_v26 }
 0x1fb   : > { %1062 = shalt.err (!%p1059_p7)
}
 0x1fc   : > { %s1063_s4 = scalar_lea.hbm %s1490_s17, 512  ;;  %s1067_s16 = scalar_lea.hbm %s1583_s6, 1024 }
 0x1fd   : > { %p1064_p13 = scmp.ne.s32.totalorder %s1490_s17, %s1063_s4  ;;  %p1068_p11 = scmp.lt.u32.totalorder %s1490_s17, %s1583_s6 }
 0x1fe   : > { %p1069_p12 = scmp.lt.u32.totalorder %s1067_s16, %s1063_s4  ;;  %p1071_p1 = scmp.lt.u32.totalorder %s1063_s4, %s1490_s17 }
 0x1ff   : > { %p1065_p2 = pnand %p1064_p13, %p1613_p6 }
 0x200   : > { %p1070_p0 = por %p1069_p12, %p1068_p11 }
 0x201   : > { %p1066_p8 = pneg %p1065_p2 }
 0x202   : > { %p1072_p10 = por %p1071_p1, %p1070_p0 }
 0x204   : > { %p1073_p3 = pnand %p1072_p10, %p1066_p8 }
 0x206   : > { %1076 = shalt.err (!%p1073_p3)
}
 0x207   : > { %s1189_s20 = smov 128   ;;  %s1190_s13 = smov 8  }
 0x208   : > { %839 = dma.vmem_to_hbm [thread:$0]  (%p1613_p6), %s1481_s10, 512, %s1490_s17, %s567_s30, %s1189_s20, %s1189_s20, %s1190_s13  }
 0x209   : > { %s572_s27 = scalar_lea.sflag [#allocation12], %s1442_s2  ;;  %s1077_s22 = scalar_lea.vmem %s1483_s23, 512 }
 0x20a   : > { %p1078_p4 = scmp.ne.s32.totalorder %s1483_s23, %s1077_s22  ;;  %s1191_s9 = smov [#allocation11]  }
 0x20b   : > { %s1081_s15 = sshll.u32 %s1191_s9, 4  ;;  %s1082_s15 = int_to_ptr.vmem [resolvable:$false] %s1081_s15 }
 0x20c   : > { %p1079_p9 = pnand %p1078_p4, %p1613_p6  ;;  %s1083_s19 = scalar_lea.vmem %s1082_s15, 1024 }
 0x20d   : > { %p1084_p7 = scmp.lt.s32.totalorder %s1483_s23, %s1082_s15  ;;  %p1085_p13 = scmp.lt.s32.totalorder %s1083_s19, %s1077_s22 }
 0x20e   : > { %p1080_p5 = pneg %p1079_p9 }
 0x20f   : > { %p1086_p2 = por %p1085_p13, %p1084_p7 }
 0x211   : > { %p1087_p8 = pnand %p1086_p2, %p1080_p5 }
 0x213   : > { %1090 = shalt.err (!%p1087_p8)
}
 0x214   : > { %s1091_s10 = scalar_lea.hbm %s1495_s11, 512  ;;  %s1095_s21 = scalar_lea.hbm %s1584_s7, 1024 }
 0x215   : > { %p1092_p11 = scmp.ne.s32.totalorder %s1495_s11, %s1091_s10  ;;  %p1096_p1 = scmp.lt.u32.totalorder %s1495_s11, %s1584_s7 }
 0x216   : > { %p1097_p10 = scmp.lt.u32.totalorder %s1095_s21, %s1091_s10  ;;  %p1099_p4 = scmp.lt.u32.totalorder %s1091_s10, %s1495_s11 }
 0x217   : > { %p1093_p12 = pnand %p1092_p11, %p1613_p6 }
 0x218   : > { %p1098_p3 = por %p1097_p10, %p1096_p1 }
 0x219   : > { %p1094_p0 = pneg %p1093_p12 }
 0x21a   : > { %p1100_p9 = por %p1099_p4, %p1098_p3 }
 0x21c   : > { %p1101_p5 = pnand %p1100_p9, %p1094_p0 }
 0x21e   : > { %1104 = shalt.err (!%p1101_p5)
}
 0x21f   : > { %840 = dma.vmem_to_hbm [thread:$0]  (%p1613_p6), %s1483_s23, 512, %s1495_s11, %s572_s27, %s1189_s20, %s1189_s20, %s1190_s13  }
 0x220 PF: > { %s1614_s28 = sld [smem:[#allocation20_spill]]  ;;  %s618_s16 = sand.u32 1, %s1155_s24  }
 0x221   : > { %p1616_p13 = scmp.ge.s32.totalorder %s1175_s29, 2  ;;  %s619_s8 = scalar_lea.sflag [#allocation4], %s618_s16 }
 0x226   : > { %p1615_p7 = scmp.ne.s32.totalorder %s1614_s28, 0 }
 0x228   : > { %p858_p2 = pnand %p1616_p13, %p1615_p7 }
 0x22a   : > { %1146 = dma.done.wait (!%p858_p2), %s619_s8, 512  }
 0x22b   : > { %1148 = vsyncadd (!%p858_p2), %s619_s8, 4294966784  ;;  %s628_s14 = scalar_lea.sflag [#allocation12], %s618_s16 }
 0x22c   : > { %1150 = dma.done.wait (!%p858_p2), %s628_s14, 512  }
 0x22d   : > { %1152 = vsyncadd (!%p858_p2), %s628_s14, 4294966784  ;;  %s31_s29 = sadd.s32 1, %s1175_s29   ;;  %s1617_s2 = sld [smem:[#allocation22_spill]] }
 0x22e   : > { %p28_p8 = scmp.ge.s32.totalorder %s31_s29, 4   ;;  %s1618_s27 = sld [smem:[#allocation19_spill]] }
 0x22f   : > { %s1619_s28 = sld [smem:[#allocation21_spill]]  ;;  %s1620_s24 = smov %s1159_s25 }
 0x230   : > { %s1621_s25 = smov %s1163_s26  ;;  %30 = sbr.rel (!%p28_p8) target bundleno = 14 (0xe), region = 133 }
 0x233   : > { %s1622_s26 = smov %s1617_s2 }
 0x237   :  { %633 = vsyncpa [#allocation3], 1 }
 0x238   :  { %635 = vsyncpa [#allocation3 + $0x1], 1 }
 0x239   :  { %636 = vsyncpa [#allocation6], 1 }
 0x23a   :  { %638 = vsyncpa [#allocation6 + $0x1], 1 }
 0x23b   :  { %639 = vsyncpa [#allocation9], 1 }
 0x23c   :  { %640 = vsyncpa [#allocation4], 1 }
 0x23d   :  { %642 = vsyncpa [#allocation4 + $0x1], 1 }
 0x23e   :  { %643 = vsyncpa [#allocation12], 1 }
 0x23f   :  { %645 = vsyncpa [#allocation12 + $0x1], 1 }

</bundles_post_ra>
